<compile_context>
chip_gen: v5e
topology: v5e:2x2
jax: 0.10.0
libtpu: 0.0.40
codegen_flags: <defaults>
</compile_context>

<pallas_src>
import functools

import jax
import jax.numpy as jnp
from jax.experimental import pallas as pl
from jax.experimental.pallas import tpu as pltpu


# Plain Python float (NOT a jnp array) so the kernel does not capture a constant.
_NEG = -1e30


def _round_up(x, m):
    return ((x + m - 1) // m) * m


# -----------------------------------------------------------------------------
# Fused kernel: matmul tile -> online softmax stats -> in-place normalize at end
# -----------------------------------------------------------------------------
def _generator_kernel(x_ref, w_ref, mask_ref, o_ref, m_ref, l_ref, *,
                      log_probs, use_mask, tv):
    # x_ref    : (tm, H)      bf16 activation tile (resident across the vocab axis)
    # w_ref    : (tv, H)      bf16 weight tile (torch (V, H) layout; contract on H)
    # mask_ref : (1, tv)      f32 additive pad mask (0 / -inf)
    # o_ref    : (tm, V_pad)  output row block, resident in VMEM across the vocab axis
    # m_ref    : (tm, 1)      f32 running max          (scratch)
    # l_ref    : (tm, 1)      f32 running sum of exp   (scratch)
    j = pl.program_id(1)

    @pl.when(j == 0)
    def _init():
        m_ref[...] = jnp.full(m_ref.shape, _NEG, dtype=jnp.float32)
        l_ref[...] = jnp.zeros(l_ref.shape, dtype=jnp.float32)

    # (tm, H) x (tv, H)^T -> (tm, tv) on the MXU, bf16 inputs, f32 accumulate.
    logits = jax.lax.dot_general(
        x_ref[...], w_ref[...],
        dimension_numbers=(((1,), (1,)), ((), ())),
        preferred_element_type=jnp.float32,
    )

    if use_mask:
        logits = logits + mask_ref[...]        # additive pad mask (exact torch semantics)
        stats = jnp.maximum(logits, _NEG)      # finite clamp for the online statistics
    else:
        stats = logits

    # Online (flash-style) softmax statistics over the vocab axis.
    m_prev = m_ref[...]
    m_new = jnp.maximum(m_prev, jnp.max(stats, axis=-1, keepdims=True))
    alpha = jnp.exp(m_prev - m_new)
    l_ref[...] = alpha * l_ref[...] + jnp.sum(jnp.exp(stats - m_new),
                                              axis=-1, keepdims=True)
    m_ref[...] = m_new

    # Stash this vocab tile's raw (masked) logits into the VMEM-resident output row.
    start = pl.multiple_of(j * tv, tv)
    o_ref[:, pl.ds(start, tv)] = logits.astype(o_ref.dtype)

    # Last vocab tile: normalize the whole resident row in place (fused "pass 2").
    @pl.when(j == pl.num_programs(1) - 1)
    def _finalize():
        lse = m_ref[...] + jnp.log(l_ref[...])
        row = o_ref[...].astype(jnp.float32) - lse
        if log_probs:
            o_ref[...] = row.astype(o_ref.dtype)
        else:
            o_ref[...] = jnp.exp(row).astype(o_ref.dtype)


# -----------------------------------------------------------------------------
# Tile / VMEM budgeting (generation-aware: default budget fits v7x's 64 MiB VMEM)
# -----------------------------------------------------------------------------
def _pick_tiles(M, V, H, tm, tv, out_bytes, budget):
    tm_eff = max(16, _round_up(min(tm, _round_up(M, 16)), 16))   # bf16 sublane packing
    tv_eff = max(128, (min(tv, _round_up(V, 128)) // 128) * 128)
    while True:
        V_pad = _round_up(V, tv_eff)
        est = (2 * tm_eff * H * 2                 # x tile, double-buffered (bf16)
               + 2 * tv_eff * H * 2               # weight tile, double-buffered (bf16)
               + 2 * 8 * tv_eff * 4               # mask tile (sublane padded)
               + 2 * tm_eff * V_pad * out_bytes   # resident output row, double-buffered
               + 2 * tm_eff * 128 * 4)            # m/l scratch (lane padded)
        if est <= budget:
            break
        if tm_eff > 16:
            tm_eff = max(16, ((tm_eff // 2) // 16) * 16)
        elif tv_eff > 256:
            tv_eff = max(256, ((tv_eff // 2) // 128) * 128)
        else:
            break
    V_pad = _round_up(V, tv_eff)
    M_pad = _round_up(M, tm_eff)
    return tm_eff, tv_eff, M_pad, V_pad, est


def prepare_generator_weight(weight, *, tv=2048):
    """Cast the projection weight to bf16 and pad the vocab dim ONCE (hoist out of
    the per-call path).  Pass n_words=<true vocab> to generator_forward with it."""
    V, H = weight.shape
    tv_eff = max(128, (min(tv, _round_up(V, 128)) // 128) * 128)
    V_pad = _round_up(V, tv_eff)
    w = weight.astype(jnp.bfloat16)
    if V_pad != V:
        w = jnp.pad(w, ((0, V_pad - V), (0, 0)))
    return w


# -----------------------------------------------------------------------------
# Wrapper
# -----------------------------------------------------------------------------
def generator_forward(x, weight, *, n_words=None, padding_idx=-1, log_probs=True,
                      tm=256, tv=2048, out_dtype=jnp.float32,
                      vmem_budget_bytes=48 << 20, vmem_limit_bytes=None):
    """x: (..., H) float.  weight: (V, H) torch nn.Linear layout (no bias), or a
    pre-prepared (V_pad, H) bf16 weight from prepare_generator_weight (then pass
    n_words=V)."""
    orig_shape = x.shape
    H = orig_shape[-1]
    W_rows, Hw = weight.shape
    assert Hw == H
    V = int(n_words) if n_words is not None else W_rows
    assert V <= W_rows

    x2d = x.reshape(-1, H)
    M = x2d.shape[0]
    out_bytes = jnp.dtype(out_dtype).itemsize

    tm_eff, tv_eff, M_pad, V_pad, est = _pick_tiles(
        M, V, H, tm, tv, out_bytes, vmem_budget_bytes)
    grid_m = M_pad // tm_eff
    grid_v = V_pad // tv_eff

    # Activations -> bf16, pad rows to the tile multiple (padded rows are zeros;
    # their outputs are sliced off).
    x_p = x2d if x2d.dtype == jnp.bfloat16 else x2d.astype(jnp.bfloat16)
    if M_pad != M:
        x_p = jnp.pad(x_p, ((0, M_pad - M), (0, 0)))

    # Weight: use as-is if already prepared (bf16, padded); else cast/pad per call.
    if weight.dtype == jnp.bfloat16 and W_rows == V_pad:
        w_p = weight
    else:
        w_src = weight if W_rows == V else weight[:V]
        w_p = w_src.astype(jnp.bfloat16)
        if V_pad != V:
            w_p = jnp.pad(w_p, ((0, V_pad - V), (0, 0)))

    # Additive pad mask over the (padded) vocab axis: 0 for real columns,
    # -inf for vocab-padding columns and the padding_idx column (torch _pad_2d).
    use_mask = (V_pad != V) or (padding_idx != -1)
    col = jnp.arange(V_pad, dtype=jnp.int32)
    mask = jnp.where(col >= V, -jnp.inf, 0.0).astype(jnp.float32)
    if padding_idx != -1:
        mask = mask.at[padding_idx].set(-jnp.inf)
    mask = mask.reshape(1, V_pad)

    if vmem_limit_bytes is None:
        vmem_limit_bytes = int(max(est + est // 4 + (2 << 20), 32 << 20))

    kernel = functools.partial(_generator_kernel, log_probs=log_probs,
                               use_mask=use_mask, tv=tv_eff)

    out = pl.pallas_call(
        kernel,
        out_shape=jax.ShapeDtypeStruct((M_pad, V_pad), out_dtype),
        grid_spec=pltpu.PrefetchScalarGridSpec(
            num_scalar_prefetch=0,
            grid=(grid_m, grid_v),
            in_specs=[
                pl.BlockSpec((tm_eff, H), lambda i, j: (i, 0)),    # activations
                pl.BlockSpec((tv_eff, H), lambda i, j: (j, 0)),    # streamed weight
                pl.BlockSpec((1, tv_eff), lambda i, j: (0, j)),    # pad mask
            ],
            out_specs=pl.BlockSpec((tm_eff, V_pad), lambda i, j: (i, 0)),
            scratch_shapes=[
                pltpu.VMEM((tm_eff, 1), jnp.float32),   # running max
                pltpu.VMEM((tm_eff, 1), jnp.float32),   # running sum-exp
            ],
        ),
        compiler_params=pltpu.CompilerParams(
            dimension_semantics=("parallel", "arbitrary"),
            vmem_limit_bytes=vmem_limit_bytes,
        ),
        cost_estimate=pl.CostEstimate(
            flops=2 * M_pad * H * V_pad,
            transcendentals=M_pad * V_pad * (1 if log_probs else 2),
            bytes_accessed=(M_pad * H * 2 + grid_m * V_pad * H * 2
                            + M_pad * V_pad * out_bytes),
        ),
    )(x_p, w_p, mask)
    # TODO(synk): for v7x decode-shaped calls (M <= tm) both TensorCores could be
    # used by splitting the vocab axis across cores with a tiny stats combine.

    out = out[:M, :V]
    return out.reshape(*orig_shape[:-1], V)


# -----------------------------------------------------------------------------
# Pure-JAX reference (f32 math on bf16-rounded inputs, matching kernel numerics)
# -----------------------------------------------------------------------------
def _reference(x, weight, *, padding_idx=-1, log_probs=True):
    xr = x.astype(jnp.bfloat16).astype(jnp.float32)
    wr = weight.astype(jnp.bfloat16).astype(jnp.float32)
    logits = jnp.einsum("...h,vh->...v", xr, wr)
    if padding_idx != -1:
        m = jnp.zeros((logits.shape[-1],), jnp.float32).at[padding_idx].set(-jnp.inf)
        logits = logits + m
    if log_probs:
        return jax.nn.log_softmax(logits, axis=-1)
    return jax.nn.softmax(logits, axis=-1)


if __name__ == "__main__":
    batch, seq, hidden, n_words = 2, 8, 32, 512

    key = jax.random.PRNGKey(0)
    kx, kw, kx3 = jax.random.split(key, 3)
    x = jax.random.normal(kx, (batch, seq, hidden), dtype=jnp.float32)
    # deterministic "embedding_init"-style weight (V, H), small std
    weight = 0.01 * jax.random.normal(kw, (n_words, hidden), dtype=jnp.float32)

    # Hoisted weight preparation (cast + pad once, reused across calls).
    w_prep = prepare_generator_weight(weight)

    # 1) default: padding_idx=-1, log-probs, fused single pass, single vocab tile.
    out = generator_forward(x, w_prep, n_words=n_words, padding_idx=-1, log_probs=True)
    jax.block_until_ready(out)
    ref = _reference(x, weight, padding_idx=-1, log_probs=True)
    assert out.shape == (batch, seq, n_words)
    assert jnp.allclose(out, ref, atol=2e-3, rtol=2e-3)

    # 2) padding_idx set, probabilities instead of log-probs.
    out_pad = generator_forward(x, w_prep, n_words=n_words, padding_idx=3, log_probs=False)
    jax.block_until_ready(out_pad)
    ref_pad = _reference(x, weight, padding_idx=3, log_probs=False)
    assert jnp.allclose(out_pad, ref_pad, atol=2e-3, rtol=2e-3)
    assert bool(jnp.all(out_pad[..., 3] == 0.0))

    # 3) multi-tile path (grid over both M and V, ragged M) with the raw f32 weight,
    #    exercising the online softmax and the VMEM-resident output row.
    x3 = jax.random.normal(kx3, (3, 11, hidden), dtype=jnp.float32)
    out3 = generator_forward(x3, weight, padding_idx=3, log_probs=True, tm=16, tv=128)
    jax.block_until_ready(out3)
    ref3 = _reference(x3, weight, padding_idx=3, log_probs=True)
    assert out3.shape == (3, 11, n_words)
    assert jnp.allclose(out3, ref3, atol=2e-3, rtol=2e-3)

    print("KERNEL_OK")
</pallas_src>

<mosaic_0001>
module attributes {stable_mosaic.version = 11 : i64} {
  func.func @_generator_kernel(%arg0: i32, %arg1: i32, %arg2: memref<16x32xbf16, #tpu.memory_space<vmem>>, %arg3: memref<512x32xbf16, #tpu.memory_space<vmem>>, %arg4: memref<1x512xf32, #tpu.memory_space<vmem>>, %arg5: memref<16x512xf32, #tpu.memory_space<vmem>>, %arg6: memref<16x1xf32, #tpu.memory_space<vmem>>, %arg7: memref<16x1xf32, #tpu.memory_space<vmem>>) attributes {dimension_semantics = [#tpu.dimension_semantics<parallel>, #tpu.dimension_semantics<arbitrary>], iteration_bounds = array<i64: 1, 1>, scalar_prefetch = 0 : i64, scratch_operands = 2 : i64, tpu.core_type = #tpu.core_type<tc>, window_params = [{transform_indices = @transform_0, window_bounds = array<i64: 16, 32>}, {transform_indices = @transform_1, window_bounds = array<i64: 512, 32>}, {transform_indices = @transform_2, window_bounds = array<i64: 1, 512>}, {transform_indices = @transform_3, window_bounds = array<i64: 16, 512>}]} {
    %c0_i32 = arith.constant 0 : i32
    %0 = arith.cmpi eq, %arg1, %c0_i32 : i32
    %1 = arith.extui %0 : i1 to i32
    %c0_i32_0 = arith.constant 0 : i32
    %2 = arith.cmpi ne, %1, %c0_i32_0 : i32
    scf.if %2 {
      %cst_17 = arith.constant -1.000000e+30 : f32
      %29 = vector.broadcast %cst_17 : f32 to vector<16x1xf32>
      %c0_18 = arith.constant 0 : index
      %c0_19 = arith.constant 0 : index
      %30 = vector.load %arg6[%c0_18, %c0_19] : memref<16x1xf32, #tpu.memory_space<vmem>>, vector<16x1xf32>
      tpu.vector_store %arg6[%c0_18, %c0_19], %29 {strides = array<i32>} : memref<16x1xf32, #tpu.memory_space<vmem>>, vector<16x1xf32>,
      %cst_20 = arith.constant 0.000000e+00 : f32
      %31 = vector.broadcast %cst_20 : f32 to vector<16x1xf32>
      %c0_21 = arith.constant 0 : index
      %c0_22 = arith.constant 0 : index
      %32 = vector.load %arg7[%c0_21, %c0_22] : memref<16x1xf32, #tpu.memory_space<vmem>>, vector<16x1xf32>
      tpu.vector_store %arg7[%c0_21, %c0_22], %31 {strides = array<i32>} : memref<16x1xf32, #tpu.memory_space<vmem>>, vector<16x1xf32>,
    } else {
    }
    %c0 = arith.constant 0 : index
    %c0_1 = arith.constant 0 : index
    %3 = vector.load %arg2[%c0, %c0_1] : memref<16x32xbf16, #tpu.memory_space<vmem>>, vector<16x32xbf16>
    %c0_2 = arith.constant 0 : index
    %c0_3 = arith.constant 0 : index
    %4 = vector.load %arg3[%c0_2, %c0_3] : memref<512x32xbf16, #tpu.memory_space<vmem>>, vector<512x32xbf16>
    %cst = arith.constant dense<0.000000e+00> : vector<16x512xf32>
    %5 = tpu.matmul %3, %4, %cst {dimension_numbers = #tpu.dot_dimension_numbers<[1], [1], [0], [0], [0, 0, 1, 0], [], []>} : vector<16x32xbf16>, vector<512x32xbf16>, vector<16x512xf32> -> vector<16x512xf32>
    %c0_4 = arith.constant 0 : index
    %c0_5 = arith.constant 0 : index
    %6 = vector.load %arg6[%c0_4, %c0_5] : memref<16x1xf32, #tpu.memory_space<vmem>>, vector<16x1xf32>
    %cst_6 = arith.constant dense<0xFF800000> : vector<16xf32>
    %7 = vector.multi_reduction <maximumf>, %5, %cst_6 [1] : vector<16x512xf32> to vector<16xf32>
    %8 = vector.shape_cast %7 : vector<16xf32> to vector<16x1xf32>
    %9 = arith.maximumf %6, %8 : vector<16x1xf32>
    %10 = arith.subf %6, %9 : vector<16x1xf32>
    %11 = math.exp %10 : vector<16x1xf32>
    %c0_7 = arith.constant 0 : index
    %c0_8 = arith.constant 0 : index
    %12 = vector.load %arg7[%c0_7, %c0_8] : memref<16x1xf32, #tpu.memory_space<vmem>>, vector<16x1xf32>
    %13 = arith.mulf %11, %12 : vector<16x1xf32>
    %14 = vector.broadcast %9 : vector<16x1xf32> to vector<16x512xf32>
    %15 = arith.subf %5, %14 : vector<16x512xf32>
    %16 = math.exp %15 : vector<16x512xf32>
    %cst_9 = arith.constant dense<0.000000e+00> : vector<16xf32>
    %17 = vector.multi_reduction <add>, %16, %cst_9 [1] : vector<16x512xf32> to vector<16xf32>
    %18 = vector.shape_cast %17 : vector<16xf32> to vector<16x1xf32>
    %19 = arith.addf %13, %18 : vector<16x1xf32>
    %c0_10 = arith.constant 0 : index
    %c0_11 = arith.constant 0 : index
    %20 = vector.load %arg7[%c0_10, %c0_11] : memref<16x1xf32, #tpu.memory_space<vmem>>, vector<16x1xf32>
    tpu.vector_store %arg7[%c0_10, %c0_11], %19 {strides = array<i32>} : memref<16x1xf32, #tpu.memory_space<vmem>>, vector<16x1xf32>,
    %c0_12 = arith.constant 0 : index
    %c0_13 = arith.constant 0 : index
    %21 = vector.load %arg6[%c0_12, %c0_13] : memref<16x1xf32, #tpu.memory_space<vmem>>, vector<16x1xf32>
    tpu.vector_store %arg6[%c0_12, %c0_13], %9 {strides = array<i32>} : memref<16x1xf32, #tpu.memory_space<vmem>>, vector<16x1xf32>,
    %c512_i32 = arith.constant 512 : i32
    %22 = arith.muli %arg1, %c512_i32 : i32
    %23 = tpu.assume_multiple %22, 512 : i32
    %c0_14 = arith.constant 0 : index
    %24 = arith.index_cast %23 : i32 to index
    %25 = vector.load %arg5[%c0_14, %24] : memref<16x512xf32, #tpu.memory_space<vmem>>, vector<16x512xf32>
    tpu.vector_store %arg5[%c0_14, %24], %5 {strides = array<i32>} : memref<16x512xf32, #tpu.memory_space<vmem>>, vector<16x512xf32>,
    %c0_i32_15 = arith.constant 0 : i32
    %26 = arith.cmpi eq, %arg1, %c0_i32_15 : i32
    %27 = arith.extui %26 : i1 to i32
    %c0_i32_16 = arith.constant 0 : i32
    %28 = arith.cmpi ne, %27, %c0_i32_16 : i32
    scf.if %28 {
      %c0_17 = arith.constant 0 : index
      %c0_18 = arith.constant 0 : index
      %29 = vector.load %arg6[%c0_17, %c0_18] : memref<16x1xf32, #tpu.memory_space<vmem>>, vector<16x1xf32>
      %c0_19 = arith.constant 0 : index
      %c0_20 = arith.constant 0 : index
      %30 = vector.load %arg7[%c0_19, %c0_20] : memref<16x1xf32, #tpu.memory_space<vmem>>, vector<16x1xf32>
      %31 = math.log %30 : vector<16x1xf32>
      %32 = arith.addf %29, %31 : vector<16x1xf32>
      %c0_21 = arith.constant 0 : index
      %c0_22 = arith.constant 0 : index
      %33 = vector.load %arg5[%c0_21, %c0_22] : memref<16x512xf32, #tpu.memory_space<vmem>>, vector<16x512xf32>
      %34 = vector.broadcast %32 : vector<16x1xf32> to vector<16x512xf32>
      %35 = arith.subf %33, %34 : vector<16x512xf32>
      %c0_23 = arith.constant 0 : index
      %c0_24 = arith.constant 0 : index
      %36 = vector.load %arg5[%c0_23, %c0_24] : memref<16x512xf32, #tpu.memory_space<vmem>>, vector<16x512xf32>
      tpu.vector_store %arg5[%c0_23, %c0_24], %35 {strides = array<i32>} : memref<16x512xf32, #tpu.memory_space<vmem>>, vector<16x512xf32>,
    } else {
    }
    return
  }
  func.func @transform_0(%arg0: i32, %arg1: i32) -> (i32, i32) {
    %c0_i32 = arith.constant 0 : i32
    %c0_i32_0 = arith.constant 0 : i32
    return %arg0, %c0_i32 : i32, i32
  }
  func.func @transform_1(%arg0: i32, %arg1: i32) -> (i32, i32) {
    %c0_i32 = arith.constant 0 : i32
    %c0_i32_0 = arith.constant 0 : i32
    return %arg1, %c0_i32 : i32, i32
  }
  func.func @transform_2(%arg0: i32, %arg1: i32) -> (i32, i32) {
    %c0_i32 = arith.constant 0 : i32
    %c0_i32_0 = arith.constant 0 : i32
    return %c0_i32, %arg1 : i32, i32
  }
  func.func @transform_3(%arg0: i32, %arg1: i32) -> (i32, i32) {
    %c0_i32 = arith.constant 0 : i32
    %c0_i32_0 = arith.constant 0 : i32
    return %arg0, %c0_i32 : i32, i32
  }
}

</mosaic_0001>

<bundles_post_ra>
// kernel: tpu_custom_call.1
= control target key start
LH: loop header
LB: loop body
LE: loop exit
PB: predicated region body
PF: predicated region fallthrough
CT: control target
= control target key end

     0   :  { %vm255_vm0 = vcmask 261120   ;;  %s1005_s0 = inlined_call_operand.vmem [shape: bf16[16,32], index: 0, kind: input, shape index: {}]   ;;  %s1006_s1 = inlined_call_operand.vmem [shape: bf16[512,32], index: 1, kind: input, shape index: {}]   ;;  %s1007_s2 = inlined_call_operand.vmem [shape: f32[1,512], index: 2, kind: input, shape index: {}]   ;;  %s1008_s3 = inlined_call_operand.hbm [shape: f32[16,512], index: 3, kind: output, shape index: {}]  }
   0x1   :  { %v710_v0 = vld [vmem:[%s1006_s1 + $0x38] sm:$0xff]  ;;  %v709_v8 = vld [vmem:[%s1006_s1 + $0x30] sm:$0xff] }
   0x2   :  { %v718_v1 = vld [vmem:[%s1006_s1 + $0x78] sm:$0xff]  ;;  %v281_v4 = vsel %vm255_vm0, %v710_v0, 0  ;;  %v717_v9 = vld [vmem:[%s1006_s1 + $0x70] sm:$0xff] }
   0x3   :  { %v726_v2 = vld [vmem:[%s1006_s1 + $0xb8] sm:$0xff]  ;;  %v305_v5 = vsel %vm255_vm0, %v718_v1, 0  ;;  %355 = vmatpush.bf16.xpose.msra.mxu0 %v281_v4  ;;  %v725_v10 = vld [vmem:[%s1006_s1 + $0xb0] sm:$0xff] }
   0x4   :  { %v734_v3 = vld [vmem:[%s1006_s1 + $0xf8] sm:$0xff]  ;;  %v329_v6 = vsel %vm255_vm0, %v726_v2, 0  ;;  %369 = vmatpush.bf16.xpose.msra.mxu1 %v305_v5  ;;  %v733_v11 = vld [vmem:[%s1006_s1 + $0xf0] sm:$0xff] }
   0x5   :  { %v353_v7 = vsel %vm255_vm0, %v734_v3, 0  ;;  %383 = vmatpush.bf16.xpose.msra.mxu2 %v329_v6 }
   0x6   :  { %397 = vmatpush.bf16.xpose.msra.mxu3 %v353_v7 }
   0x7   :  { %8 = vsyncpa [#allocation5], 0  ;;  %v278_v12 = vsel %vm255_vm0, %v709_v8, 0  ;;  %v302_v13 = vsel %vm255_vm0, %v717_v9, 0  ;;  %v326_v14 = vsel %vm255_vm0, %v725_v10, 0  ;;  %v350_v15 = vsel %vm255_vm0, %v733_v11, 0 }
   0x8   :  { %v708_v16 = vld [vmem:[%s1006_s1 + $0x28] sm:$0xff]  ;;  %v707_v24 = vld [vmem:[%s1006_s1 + $0x20] sm:$0xff]  ;;  %v706_v32 = vld [vmem:[%s1006_s1 + $0x18] sm:$0xff]  ;;  %vm19_vm1 = vcmask 7168   ;;  %s552_s23 = sshll.u32 %s1008_s3, 4  ;;  %s797_s24 = smov 512   ;;  %s553_s23 = int_to_ptr.hbm [resolvable:$true] %s552_s23 }
   0x9   :  { %v716_v17 = vld [vmem:[%s1006_s1 + $0x68] sm:$0xff]  ;;  %v275_v20 = vsel %vm255_vm0, %v708_v16, 0  ;;  %v715_v25 = vld [vmem:[%s1006_s1 + $0x60] sm:$0xff]  ;;  %v272_v28 = vsel %vm255_vm0, %v707_v24, 0  ;;  %v714_v33 = vld [vmem:[%s1006_s1 + $0x58] sm:$0xff]  ;;  %v269_v36 = vsel %vm255_vm0, %v706_v32, 0 }
   0xa   :  { %v724_v18 = vld [vmem:[%s1006_s1 + $0xa8] sm:$0xff]  ;;  %v299_v21 = vsel %vm255_vm0, %v716_v17, 0  ;;  %v723_v26 = vld [vmem:[%s1006_s1 + $0xa0] sm:$0xff]  ;;  %v296_v29 = vsel %vm255_vm0, %v715_v25, 0  ;;  %v722_v34 = vld [vmem:[%s1006_s1 + $0x98] sm:$0xff]  ;;  %v293_v37 = vsel %vm255_vm0, %v714_v33, 0 }
   0xb   :  { %356 = vmatpush.bf16.xpose.msra.mxu0 %v278_v12  ;;  %v732_v19 = vld [vmem:[%s1006_s1 + $0xe8] sm:$0xff]  ;;  %v323_v22 = vsel %vm255_vm0, %v724_v18, 0  ;;  %v731_v27 = vld [vmem:[%s1006_s1 + $0xe0] sm:$0xff]  ;;  %v320_v30 = vsel %vm255_vm0, %v723_v26, 0  ;;  %v730_v35 = vld [vmem:[%s1006_s1 + $0xd8] sm:$0xff]  ;;  %v317_v38 = vsel %vm255_vm0, %v722_v34, 0 }
   0xc   :  { %370 = vmatpush.bf16.xpose.msra.mxu1 %v302_v13  ;;  %v347_v23 = vsel %vm255_vm0, %v732_v19, 0  ;;  %v344_v31 = vsel %vm255_vm0, %v731_v27, 0  ;;  %v341_v39 = vsel %vm255_vm0, %v730_v35, 0  ;;  %v705_v40 = vld [vmem:[%s1006_s1 + $0x10] sm:$0xff]  ;;  %v704_v48 = vld [vmem:[%s1006_s1 + $0x8] sm:$0xff]  ;;  %v703_v56 = vld [vmem:[%s1006_s1] sm:$0xff] }
   0xd   :  { %384 = vmatpush.bf16.xpose.msra.mxu2 %v326_v14  ;;  %v713_v41 = vld [vmem:[%s1006_s1 + $0x50] sm:$0xff]  ;;  %v266_v44 = vsel %vm255_vm0, %v705_v40, 0  ;;  %v712_v49 = vld [vmem:[%s1006_s1 + $0x48] sm:$0xff]  ;;  %v263_v52 = vsel %vm255_vm0, %v704_v48, 0  ;;  %v711_v57 = vld [vmem:[%s1006_s1 + $0x40] sm:$0xff]  ;;  %v260_v60 = vsel %vm255_vm0, %v703_v56, 0 }
   0xe   :  { %398 = vmatpush.bf16.xpose.msra.mxu3 %v350_v15  ;;  %v721_v42 = vld [vmem:[%s1006_s1 + $0x90] sm:$0xff]  ;;  %v290_v45 = vsel %vm255_vm0, %v713_v41, 0  ;;  %v720_v50 = vld [vmem:[%s1006_s1 + $0x88] sm:$0xff]  ;;  %v287_v53 = vsel %vm255_vm0, %v712_v49, 0  ;;  %v719_v58 = vld [vmem:[%s1006_s1 + $0x80] sm:$0xff]  ;;  %v284_v61 = vsel %vm255_vm0, %v711_v57, 0 }
   0xf   :  { %v729_v43 = vld [vmem:[%s1006_s1 + $0xd0] sm:$0xff]  ;;  %v314_v46 = vsel %vm255_vm0, %v721_v42, 0  ;;  %v728_v51 = vld [vmem:[%s1006_s1 + $0xc8] sm:$0xff]  ;;  %v311_v54 = vsel %vm255_vm0, %v720_v50, 0  ;;  %v727_v59 = vld [vmem:[%s1006_s1 + $0xc0] sm:$0xff]  ;;  %v308_v62 = vsel %vm255_vm0, %v719_v58, 0 }
  0x10   :  { %v338_v47 = vsel %vm255_vm0, %v729_v43, 0  ;;  %v335_v55 = vsel %vm255_vm0, %v728_v51, 0  ;;  %v332_v63 = vsel %vm255_vm0, %v727_v59, 0  ;;  %v702_v0 = vld [vmem:[%s1005_s0] sm:$0xff]  ;;  %v793_v15 = vmov -1e+30  }
  0x11   :  { %20 = vst.msk [vmem:[#allocation2] sm:$0xff] %vm19_vm1, %v793_v15  ;;  %v794_v16 = vmov 0   ;;  %v795_v17 = vmov 0.0   ;;  %s796_s0 = smov [#allocation4]   ;;  %s798_s25 = smov 32  }
  0x12   :  { %21 = vst.msk [vmem:[#allocation2 + $0x8] sm:$0xff] %vm19_vm1, %v793_v15  ;;  %741 = vset.pattern.permute.xlu1 %v794_v16  ;;  %742 = vset.pattern.permute.xlu0 %v794_v16  ;;  %s550_s1 = sshll.u32 %s796_s0, 4  ;;  %s551_s1 = int_to_ptr.vmem [resolvable:$true] %s550_s1 }
  0x13   :  { %357 = vmatpush.bf16.xpose.msra.mxu0 %v275_v20  ;;  %22 = vst.msk [vmem:[#allocation3] sm:$0xff] %vm19_vm1, %v795_v17 }
  0x14   :  { %371 = vmatpush.bf16.xpose.msra.mxu1 %v299_v21  ;;  %23 = vst.msk [vmem:[#allocation3 + $0x8] sm:$0xff] %vm19_vm1, %v795_v17 }
  0x15   :  { %385 = vmatpush.bf16.xpose.msra.mxu2 %v323_v22 }
  0x16   :  { %399 = vmatpush.bf16.xpose.msra.mxu3 %v347_v23 }
  0x18   :  { %v411_v18 = vld [vmem:[#allocation2] sm:$0xff] }
  0x19   :  { %v412_v22 = vld [vmem:[#allocation2 + $0x8] sm:$0xff] }
  0x1b   :  { %358 = vmatpush.bf16.xpose.msra.mxu0 %v272_v28 }
  0x1c   :  { %372 = vmatpush.bf16.xpose.msra.mxu1 %v296_v29 }
  0x1d   :  { %386 = vmatpush.bf16.xpose.msra.mxu2 %v320_v30 }
  0x1e   :  { %400 = vmatpush.bf16.xpose.msra.mxu3 %v344_v31 }
  0x23   :  { %359 = vmatpush.bf16.xpose.msra.mxu0 %v269_v36 }
  0x24   :  { %373 = vmatpush.bf16.xpose.msra.mxu1 %v293_v37 }
  0x25   :  { %387 = vmatpush.bf16.xpose.msra.mxu2 %v317_v38 }
  0x26   :  { %401 = vmatpush.bf16.xpose.msra.mxu3 %v341_v39 }
  0x2b   :  { %360 = vmatpush.bf16.xpose.msra.mxu0 %v266_v44 }
  0x2c   :  { %374 = vmatpush.bf16.xpose.msra.mxu1 %v290_v45 }
  0x2d   :  { %388 = vmatpush.bf16.xpose.msra.mxu2 %v314_v46 }
  0x2e   :  { %402 = vmatpush.bf16.xpose.msra.mxu3 %v338_v47 }
  0x33   :  { %361 = vmatpush.bf16.xpose.msra.mxu0 %v263_v52 }
  0x34   :  { %375 = vmatpush.bf16.xpose.msra.mxu1 %v287_v53 }
  0x35   :  { %389 = vmatpush.bf16.xpose.msra.mxu2 %v311_v54 }
  0x36   :  { %403 = vmatpush.bf16.xpose.msra.mxu3 %v335_v55 }
  0x3b   :  { %362 = vmatpush.bf16.xpose.msra.mxu0 %v260_v60 }
  0x3c   :  { %376 = vmatpush.bf16.xpose.msra.mxu1 %v284_v61  ;;  %v431_v61 = vld [vmem:[#allocation3] sm:$0xff] }
  0x3d   :  { %390 = vmatpush.bf16.xpose.msra.mxu2 %v308_v62 }
  0x3e   :  { %404 = vmatpush.bf16.xpose.msra.mxu3 %v332_v63 }
  0x42   :  { %698 = vmatmul.msk.bf16.vlgmr.msra.gmra.mxu0 %vm255_vm0, %v702_v0 }
  0x43   :  { %699 = vmatmul.msk.bf16.vlgmr.msra.gmra.mxu1 %vm255_vm0, %v702_v0 }
  0x44   :  { %700 = vmatmul.msk.bf16.vlgmr.msra.gmra.mxu2 %vm255_vm0, %v702_v0 }
  0x45   :  { %701 = vmatmul.msk.bf16.vlgmr.msra.gmra.mxu3 %vm255_vm0, %v702_v0 }
  0xbf   :  { %v954_v1 = vpop.f32.mrf.mxu0 }
  0xc0   :  { %v956_v2 = vpop.f32.mrf.mxu1 }
  0xc7   :  { %v958_v3 = vpop.f32.mrf.mxu2  ;;  %v966_v8 = vpop.f32.mrf.mxu0 }
  0xc8   :  { %v960_v4 = vpop.f32.mrf.mxu3  ;;  %v413_v5 = vmax.f32 %v954_v1, %v958_v3  ;;  %v968_v9 = vpop.f32.mrf.mxu1 }
  0xc9   :  { %v414_v6 = vmax.f32 %v956_v2, %v960_v4 }
  0xcb   :  { %v415_v7 = vmax.f32 %v413_v5, %v414_v6  ;;  %v432_v6 = vld [vmem:[#allocation3 + $0x8] sm:$0xff] }
  0xcd   :  { %416 = vmax.xlane.f32.xlu0 %v415_v7 }
  0xcf   :  { %v970_v10 = vpop.f32.mrf.mxu2 }
  0xd0   :  { %v972_v11 = vpop.f32.mrf.mxu3  ;;  %v418_v12 = vmax.f32 %v966_v8, %v970_v10 }
  0xd1   :  { %v419_v13 = vmax.f32 %v968_v9, %v972_v11 }
  0xd3   :  { %v420_v14 = vmax.f32 %v418_v12, %v419_v13 }
  0xd5   :  { %421 = vmax.xlane.f32.xlu0 %v420_v14 }
 0x140   :  { %v417_v19 = vpop.xlane.xlu0 %416 }
 0x141   :  { %v423_v20 = vmax.f32 %v411_v18, %v417_v19 }
 0x143   :  { %v425_v21 = vsub.f32 %v411_v18, %v423_v20  ;;  %484 = vst.msk [vmem:[#allocation2] sm:$0xff] %vm19_vm1, %v423_v20  ;;  %437 = vperm.xlu1 %741, %v423_v20  }
 0x145   :  { %v427_v58 = vmul.f32 1.442695, %v425_v21 }
 0x148   :  { %v422_v23 = vpop.xlane.xlu0 %421 }
 0x149   :  { %v424_v24 = vmax.f32 %v412_v22, %v422_v23 }
 0x14a   :  { %v502_v18 = vld [vmem:[#allocation2] sm:$0xff] }
 0x14b   :  { %v426_v25 = vsub.f32 %v412_v22, %v424_v24  ;;  %485 = vst.msk [vmem:[#allocation2 + $0x8] sm:$0xff] %vm19_vm1, %v424_v24  ;;  %442 = vperm.xlu1 %741, %v424_v24  }
 0x14d   :  { %v429_v59 = vmul.f32 1.442695, %v426_v25 }
 0x152   :  { %v503_v22 = vld [vmem:[#allocation2 + $0x8] sm:$0xff] }
 0x1b5   :  { %v438_v26 = vpop.permute.xlu1 %437 }
 0x1b6   :  { %v445_v27 = vsub.f32 %v954_v1, %v438_v26  ;;  %v446_v28 = vsub.f32 %v956_v2, %v438_v26  ;;  %v447_v29 = vsub.f32 %v958_v3, %v438_v26  ;;  %v448_v30 = vsub.f32 %v960_v4, %v438_v26 }
 0x1b8   :  { %v453_v31 = vmul.f32 1.442695, %v445_v27  ;;  %v455_v32 = vmul.f32 1.442695, %v446_v28  ;;  %v457_v33 = vmul.f32 1.442695, %v447_v29 }
 0x1b9   :  { %v459_v34 = vmul.f32 1.442695, %v448_v30 }
 0x1ba   :  { %743 = vpow2.f32 %v453_v31 }
 0x1bb   :  { %745 = vpow2.f32 %v455_v32 }
 0x1bc   :  { %747 = vpow2.f32 %v457_v33 }
 0x1bd   :  { %v443_v35 = vpop.permute.xlu1 %442  ;;  %749 = vpow2.f32 %v459_v34 }
 0x1be   :  { %v449_v36 = vsub.f32 %v966_v8, %v443_v35  ;;  %v450_v37 = vsub.f32 %v968_v9, %v443_v35  ;;  %v451_v38 = vsub.f32 %v970_v10, %v443_v35  ;;  %v452_v39 = vsub.f32 %v972_v11, %v443_v35 }
 0x1c0   :  { %v744_v40 = vpop.eup %743  ;;  %v461_v41 = vmul.f32 1.442695, %v449_v36  ;;  %v463_v42 = vmul.f32 1.442695, %v450_v37  ;;  %v465_v44 = vmul.f32 1.442695, %v451_v38 }
 0x1c1   :  { %v746_v43 = vpop.eup %745  ;;  %v467_v47 = vmul.f32 1.442695, %v452_v39 }
 0x1c2   :  { %751 = vpow2.f32 %v461_v41  ;;  %v469_v45 = vadd.f32 %v746_v43, %v744_v40  ;;  %v748_v46 = vpop.eup %747 }
 0x1c3   :  { %753 = vpow2.f32 %v463_v42  ;;  %v750_v49 = vpop.eup %749 }
 0x1c4   :  { %v470_v48 = vadd.f32 %v748_v46, %v469_v45  ;;  %755 = vpow2.f32 %v465_v44 }
 0x1c5   :  { %757 = vpow2.f32 %v467_v47 }
 0x1c6   :  { %v471_v50 = vadd.f32 %v750_v49, %v470_v48  ;;  %759 = vpow2.f32 %v427_v58 }
 0x1c7   :  { %761 = vpow2.f32 %v429_v59 }
 0x1c8   :  { %v752_v51 = vpop.eup %751  ;;  %472 = vadd.xlane.f32.xlu2 %v471_v50 }
 0x1c9   :  { %v754_v52 = vpop.eup %753 }
 0x1ca   :  { %v474_v53 = vadd.f32 %v754_v52, %v752_v51  ;;  %v756_v54 = vpop.eup %755 }
 0x1cb   :  { %v758_v56 = vpop.eup %757 }
 0x1cc   :  { %v475_v55 = vadd.f32 %v756_v54, %v474_v53  ;;  %v760_v60 = vpop.eup %759 }
 0x1cd   :  { %v433_v62 = vmul.f32 %v760_v60, %v431_v61  ;;  %v762_v5 = vpop.eup %761 }
 0x1ce   :  { %v476_v57 = vadd.f32 %v758_v56, %v475_v55  ;;  %v434_v7 = vmul.f32 %v762_v5, %v432_v6 }
 0x1d0   :  { %477 = vadd.xlane.f32.xlu2 %v476_v57 }
 0x23b   :  { %v473_v63 = vpop.xlane.xlu2 %472 }
 0x23c   :  { %v479_v0 = vadd.f32 %v473_v63, %v433_v62 }
 0x23e   :  { %482 = vst.msk [vmem:[#allocation3] sm:$0xff] %vm19_vm1, %v479_v0 }
 0x243   :  { %v478_v12 = vpop.xlane.xlu2 %477 }
 0x244   :  { %v480_v13 = vadd.f32 %v478_v12, %v434_v7 }
 0x245   :  { %v504_v14 = vld [vmem:[#allocation3] sm:$0xff] }
 0x246   :  { %483 = vst.msk [vmem:[#allocation3 + $0x8] sm:$0xff] %vm19_vm1, %v480_v13  ;;  %763 = vlog2.f32 %v504_v14 }
 0x24c   :  { %v764_v15 = vpop.eup %763 }
 0x24d   :  { %v507_v16 = vmul.f32 0.6931472, %v764_v15  ;;  %v505_v17 = vld [vmem:[#allocation3 + $0x8] sm:$0xff] }
 0x24e   :  { %765 = vlog2.f32 %v505_v17 }
 0x24f   :  { %v510_v19 = vadd.f32 %v507_v16, %v502_v18 }
 0x251   :  { %522 = vperm.xlu0 %742, %v510_v19  }
 0x254   :  { %v766_v20 = vpop.eup %765 }
 0x255   :  { %v509_v21 = vmul.f32 0.6931472, %v766_v20 }
 0x257   :  { %v511_v23 = vadd.f32 %v509_v21, %v503_v22 }
 0x259   :  { %527 = vperm.xlu1 %741, %v511_v23  }
 0x2c3   :  { %v523_v24 = vpop.permute.xlu0 %522 }
 0x2c4   :  { %v530_v25 = vsub.f32 %v954_v1, %v523_v24  ;;  %v531_v26 = vsub.f32 %v956_v2, %v523_v24  ;;  %v532_v27 = vsub.f32 %v958_v3, %v523_v24  ;;  %v533_v28 = vsub.f32 %v960_v4, %v523_v24 }
 0x2c6   :  { %538 = vst [vmem:[#allocation4] sm:$0xff] %v530_v25 }
 0x2c7   :  { %539 = vst [vmem:[#allocation4 + $0x8] sm:$0xff] %v531_v26 }
 0x2c8   :  { %540 = vst [vmem:[#allocation4 + $0x10] sm:$0xff] %v532_v27 }
 0x2c9   :  { %541 = vst [vmem:[#allocation4 + $0x18] sm:$0xff] %v533_v28 }
 0x2cb   :  { %v528_v29 = vpop.permute.xlu1 %527 }
 0x2cc   :  { %v534_v30 = vsub.f32 %v966_v8, %v528_v29  ;;  %v535_v1 = vsub.f32 %v968_v9, %v528_v29  ;;  %v536_v2 = vsub.f32 %v970_v10, %v528_v29  ;;  %v537_v3 = vsub.f32 %v972_v11, %v528_v29 }
 0x2ce   :  { %542 = vst [vmem:[#allocation4 + $0x20] sm:$0xff] %v534_v30 }
 0x2cf   :  { %543 = vst [vmem:[#allocation4 + $0x28] sm:$0xff] %v535_v1 }
 0x2d0   :  { %544 = vst [vmem:[#allocation4 + $0x30] sm:$0xff] %v536_v2 }
 0x2d1   :  { %545 = vst [vmem:[#allocation4 + $0x38] sm:$0xff] %v537_v3 }
 0x2d2   :  { %558 = dma.vmem_to_hbm [thread:$0]  %s551_s1, 1024, %s553_s23, [#allocation5], %s797_s24, %s797_s24, %s798_s25  }
 0x2d3   :  { %791 = dma.done.wait [#allocation5], 1024  }
 0x2d4   :  { %792 = vsyncadd [#allocation5], 4294966272 }
 0x2d5   :  { %563 = vsyncpa [#allocation5], 1 }

</bundles_post_ra>
